<compile_context>
chip_gen: v7x
topology: tpu7x:2x2x1
jax: 0.10.0
libtpu: 0.0.40
codegen_flags: <defaults>
</compile_context>

<pallas_src>
import jax
import jax.numpy as jnp
from jax.experimental import pallas as pl
from jax.experimental.pallas import tpu as pltpu


def _round_up(x, m):
    return (x + m - 1) // m * m


def _mlp_kernel(s_ref, a_ref, w1s_ref, w1a_ref, b1_ref, w2_ref, b2_ref,
                w3_ref, b3_ref, o_ref):
    # squeeze(1) is handled by the BlockSpec (middle dim squeezed); the bf16
    # cast happens here so the f32 inputs are read from HBM exactly once.
    s = s_ref[...].astype(jnp.bfloat16)
    a = a_ref[...].astype(jnp.bfloat16)

    # Layer 1: torch.cat([s, a], 1) @ w1 fused algebraically as split-K matmuls.
    h1 = (jnp.dot(s, w1s_ref[...], preferred_element_type=jnp.float32)
          + jnp.dot(a, w1a_ref[...], preferred_element_type=jnp.float32)
          + b1_ref[...])
    h1 = jnp.maximum(h1, 0.0).astype(jnp.bfloat16)   # ReLU on f32 acc, bf16 LHS

    # Layer 2
    h2 = jnp.dot(h1, w2_ref[...], preferred_element_type=jnp.float32) + b2_ref[...]
    h2 = jnp.maximum(h2, 0.0).astype(jnp.bfloat16)

    # Layer 3: output at true width (state_dim) -> no padded writeback.
    y = jnp.dot(h2, w3_ref[...], preferred_element_type=jnp.float32) + b3_ref[...]
    o_ref[...] = y.astype(o_ref.dtype)


def dynamics_forward(state, action, params, *, batch_tile=512):
    """state: (B, 1, state_dim) f32, action: (B, 1, action_dim) f32 -> (B, state_dim) f32."""
    w1, b1, w2, b2, w3, b3 = params
    B, _, S = state.shape
    A = action.shape[-1]
    hidden = w1.shape[1]
    state_dim = w3.shape[1]
    din = S + A

    # bf16 weights (single small pass; real users would store params in bf16),
    # f32 biases (added on the f32 accumulator).
    w1s = w1[:S].astype(jnp.bfloat16)
    w1a = w1[S:].astype(jnp.bfloat16)
    w2b = w2.astype(jnp.bfloat16)
    w3b = w3.astype(jnp.bfloat16)
    b1f = b1.astype(jnp.float32).reshape(1, hidden)
    b2f = b2.astype(jnp.float32).reshape(1, hidden)
    b3f = b3.astype(jnp.float32).reshape(1, state_dim)

    # Batch tiling: big tiles amortize the ~0.35us/step fixed cost and fill the
    # MXU M axis; force >= 2 grid steps (when B > 8) so the "parallel" axis can
    # be split across both v7x TensorCores instead of leaving one idle.
    bt = min(batch_tile, B)
    if B > 8 and pl.cdiv(B, bt) < 2:
        bt = max(8, _round_up(pl.cdiv(B, 2), 8))
    grid = (pl.cdiv(B, bt),)

    const2 = lambda i: (0, 0)   # weights/biases: fetched once, resident in VMEM

    flops = 2 * B * (din * hidden + hidden * hidden + hidden * state_dim)
    bytes_accessed = (B * din * 4                       # f32 inputs
                      + B * state_dim * 4               # f32 output
                      + (din * hidden + hidden * hidden + hidden * state_dim) * 2
                      + (2 * hidden + state_dim) * 4)   # bf16 weights + f32 biases

    out = pl.pallas_call(
        _mlp_kernel,
        out_shape=jax.ShapeDtypeStruct((B, state_dim), jnp.float32),
        grid_spec=pltpu.PrefetchScalarGridSpec(
            num_scalar_prefetch=0,
            grid=grid,
            in_specs=[
                # f32 inputs, middle (size-1) dim squeezed by the BlockSpec.
                pl.BlockSpec((bt, pl.Squeezed(), S), lambda i: (i, 0, 0)),
                pl.BlockSpec((bt, pl.Squeezed(), A), lambda i: (i, 0, 0)),
                pl.BlockSpec((S, hidden), const2),          # w1[:S]
                pl.BlockSpec((A, hidden), const2),          # w1[S:]
                pl.BlockSpec((1, hidden), const2),          # b1
                pl.BlockSpec((hidden, hidden), const2),     # w2
                pl.BlockSpec((1, hidden), const2),          # b2
                pl.BlockSpec((hidden, state_dim), const2),  # w3
                pl.BlockSpec((1, state_dim), const2),       # b3
            ],
            out_specs=pl.BlockSpec((bt, state_dim), lambda i: (i, 0)),
        ),
        compiler_params=pltpu.CompilerParams(
            dimension_semantics=("parallel",),
        ),
        cost_estimate=pl.CostEstimate(
            flops=flops, transcendentals=0, bytes_accessed=bytes_accessed),
    )(state, action, w1s, w1a, b1f, w2b, b2f, w3b, b3f)
    return out


def init_params(key, state_dim, action_dim, hidden_dim):
    """Deterministic synthetic params. Shapes mirror nn.Linear, stored transposed (in, out)."""
    din = state_dim + action_dim
    ks = jax.random.split(key, 6)

    def lin(kw, kb, fan_in, fan_out):
        bound = 1.0 / jnp.sqrt(fan_in)
        w = jax.random.uniform(kw, (fan_in, fan_out), jnp.float32, -bound, bound)
        b = jax.random.uniform(kb, (1, fan_out), jnp.float32, -bound, bound)
        return w, b

    w1, b1 = lin(ks[0], ks[1], din, hidden_dim)
    w2, b2 = lin(ks[2], ks[3], hidden_dim, hidden_dim)
    w3, b3 = lin(ks[4], ks[5], hidden_dim, state_dim)
    return (w1, b1, w2, b2, w3, b3)


if __name__ == "__main__":
    # Small shapes consistent with forward(state (B,1,S), action (B,1,A)).
    B, STATE_DIM, ACTION_DIM, HIDDEN = 64, 16, 8, 128
    key = jax.random.PRNGKey(0)
    k_s, k_a, k_p = jax.random.split(key, 3)

    state = jax.random.normal(k_s, (B, 1, STATE_DIM), jnp.float32)
    action = jax.random.normal(k_a, (B, 1, ACTION_DIM), jnp.float32)
    params = init_params(k_p, STATE_DIM, ACTION_DIM, HIDDEN)

    out = dynamics_forward(state, action, params)
    jax.block_until_ready(out)
    assert out.shape == (B, STATE_DIM)
    assert out.dtype == jnp.float32

    w1, b1, w2, b2, w3, b3 = params

    # (1) Matched-numerics reference (bf16 weights/activations, f32 accumulate):
    #     tight validation of the kernel itself.
    x16 = jnp.concatenate([state[:, 0, :], action[:, 0, :]], axis=1).astype(jnp.bfloat16)
    h1 = jnp.maximum(
        jnp.dot(x16, w1.astype(jnp.bfloat16), preferred_element_type=jnp.float32) + b1,
        0.0).astype(jnp.bfloat16)
    h2 = jnp.maximum(
        jnp.dot(h1, w2.astype(jnp.bfloat16), preferred_element_type=jnp.float32) + b2,
        0.0).astype(jnp.bfloat16)
    ref16 = jnp.dot(h2, w3.astype(jnp.bfloat16), preferred_element_type=jnp.float32) + b3
    assert jnp.allclose(out, ref16, atol=1e-2, rtol=1e-2)

    # (2) Full-f32 reference (exact PyTorch-module semantics): loose check on the
    #     deliberate bf16-weight numerics choice.
    xf = jnp.concatenate([state[:, 0, :], action[:, 0, :]], axis=1)
    h1f = jnp.maximum(xf @ w1 + b1, 0.0)
    h2f = jnp.maximum(h1f @ w2 + b2, 0.0)
    reff = h2f @ w3 + b3
    assert jnp.allclose(out, reff, atol=5e-2, rtol=5e-2)

    print("KERNEL_OK")
</pallas_src>

<mosaic_0001>
module attributes {stable_mosaic.version = 11 : i64} {
  func.func @_mlp_kernel(%arg0: i32, %arg1: memref<32x1x16xf32, #tpu.memory_space<vmem>>, %arg2: memref<32x1x8xf32, #tpu.memory_space<vmem>>, %arg3: memref<16x128xbf16, #tpu.memory_space<vmem>>, %arg4: memref<8x128xbf16, #tpu.memory_space<vmem>>, %arg5: memref<1x128xf32, #tpu.memory_space<vmem>>, %arg6: memref<128x128xbf16, #tpu.memory_space<vmem>>, %arg7: memref<1x128xf32, #tpu.memory_space<vmem>>, %arg8: memref<128x16xbf16, #tpu.memory_space<vmem>>, %arg9: memref<1x16xf32, #tpu.memory_space<vmem>>, %arg10: memref<32x16xf32, #tpu.memory_space<vmem>>) attributes {dimension_semantics = [#tpu.dimension_semantics<parallel>], iteration_bounds = array<i64: 2>, scalar_prefetch = 0 : i64, scratch_operands = 0 : i64, tpu.core_type = #tpu.core_type<tc>, window_params = [{transform_indices = @transform_0, window_bounds = array<i64: 32, 1, 16>}, {transform_indices = @transform_1, window_bounds = array<i64: 32, 1, 8>}, {pipeline_mode = #tpu.pipeline_mode<synchronous>, transform_indices = @transform_2, window_bounds = array<i64: 16, 128>}, {pipeline_mode = #tpu.pipeline_mode<synchronous>, transform_indices = @transform_3, window_bounds = array<i64: 8, 128>}, {pipeline_mode = #tpu.pipeline_mode<synchronous>, transform_indices = @transform_4, window_bounds = array<i64: 1, 128>}, {pipeline_mode = #tpu.pipeline_mode<synchronous>, transform_indices = @transform_5, window_bounds = array<i64: 128, 128>}, {pipeline_mode = #tpu.pipeline_mode<synchronous>, transform_indices = @transform_6, window_bounds = array<i64: 1, 128>}, {pipeline_mode = #tpu.pipeline_mode<synchronous>, transform_indices = @transform_7, window_bounds = array<i64: 128, 16>}, {pipeline_mode = #tpu.pipeline_mode<synchronous>, transform_indices = @transform_8, window_bounds = array<i64: 1, 16>}, {transform_indices = @transform_9, window_bounds = array<i64: 32, 16>}]} {
    %c0 = arith.constant 0 : index
    %c0_0 = arith.constant 0 : index
    %c0_1 = arith.constant 0 : index
    %0 = vector.load %arg1[%c0, %c0_0, %c0_1] : memref<32x1x16xf32, #tpu.memory_space<vmem>>, vector<32x1x16xf32>
    %1 = vector.shape_cast %0 : vector<32x1x16xf32> to vector<32x16xf32>
    %2 = arith.truncf %1 : vector<32x16xf32> to vector<32x16xbf16>
    %c0_2 = arith.constant 0 : index
    %c0_3 = arith.constant 0 : index
    %c0_4 = arith.constant 0 : index
    %3 = vector.load %arg2[%c0_2, %c0_3, %c0_4] : memref<32x1x8xf32, #tpu.memory_space<vmem>>, vector<32x1x8xf32>
    %4 = vector.shape_cast %3 : vector<32x1x8xf32> to vector<32x8xf32>
    %5 = arith.truncf %4 : vector<32x8xf32> to vector<32x8xbf16>
    %c0_5 = arith.constant 0 : index
    %c0_6 = arith.constant 0 : index
    %6 = vector.load %arg3[%c0_5, %c0_6] : memref<16x128xbf16, #tpu.memory_space<vmem>>, vector<16x128xbf16>
    %cst = arith.constant dense<0.000000e+00> : vector<32x128xf32>
    %7 = tpu.matmul %2, %6, %cst {dimension_numbers = #tpu.dot_dimension_numbers<[1], [0], [0], [1], [0, 0, 1, 1], [], []>} : vector<32x16xbf16>, vector<16x128xbf16>, vector<32x128xf32> -> vector<32x128xf32>
    %c0_7 = arith.constant 0 : index
    %c0_8 = arith.constant 0 : index
    %8 = vector.load %arg4[%c0_7, %c0_8] : memref<8x128xbf16, #tpu.memory_space<vmem>>, vector<8x128xbf16>
    %cst_9 = arith.constant dense<0.000000e+00> : vector<32x128xf32>
    %9 = tpu.matmul %5, %8, %cst_9 {dimension_numbers = #tpu.dot_dimension_numbers<[1], [0], [0], [1], [0, 0, 1, 1], [], []>} : vector<32x8xbf16>, vector<8x128xbf16>, vector<32x128xf32> -> vector<32x128xf32>
    %10 = arith.addf %7, %9 : vector<32x128xf32>
    %c0_10 = arith.constant 0 : index
    %c0_11 = arith.constant 0 : index
    %11 = vector.load %arg5[%c0_10, %c0_11] : memref<1x128xf32, #tpu.memory_space<vmem>>, vector<1x128xf32>
    %12 = vector.broadcast %11 : vector<1x128xf32> to vector<32x128xf32>
    %13 = arith.addf %10, %12 : vector<32x128xf32>
    %cst_12 = arith.constant 0.000000e+00 : f32
    %14 = vector.broadcast %cst_12 : f32 to vector<32x128xf32>
    %15 = arith.maximumf %13, %14 : vector<32x128xf32>
    %16 = arith.truncf %15 : vector<32x128xf32> to vector<32x128xbf16>
    %c0_13 = arith.constant 0 : index
    %c0_14 = arith.constant 0 : index
    %17 = vector.load %arg6[%c0_13, %c0_14] : memref<128x128xbf16, #tpu.memory_space<vmem>>, vector<128x128xbf16>
    %cst_15 = arith.constant dense<0.000000e+00> : vector<32x128xf32>
    %18 = tpu.matmul %16, %17, %cst_15 {dimension_numbers = #tpu.dot_dimension_numbers<[1], [0], [0], [1], [0, 0, 1, 1], [], []>} : vector<32x128xbf16>, vector<128x128xbf16>, vector<32x128xf32> -> vector<32x128xf32>
    %c0_16 = arith.constant 0 : index
    %c0_17 = arith.constant 0 : index
    %19 = vector.load %arg7[%c0_16, %c0_17] : memref<1x128xf32, #tpu.memory_space<vmem>>, vector<1x128xf32>
    %20 = vector.broadcast %19 : vector<1x128xf32> to vector<32x128xf32>
    %21 = arith.addf %18, %20 : vector<32x128xf32>
    %cst_18 = arith.constant 0.000000e+00 : f32
    %22 = vector.broadcast %cst_18 : f32 to vector<32x128xf32>
    %23 = arith.maximumf %21, %22 : vector<32x128xf32>
    %24 = arith.truncf %23 : vector<32x128xf32> to vector<32x128xbf16>
    %c0_19 = arith.constant 0 : index
    %c0_20 = arith.constant 0 : index
    %25 = vector.load %arg8[%c0_19, %c0_20] : memref<128x16xbf16, #tpu.memory_space<vmem>>, vector<128x16xbf16>
    %cst_21 = arith.constant dense<0.000000e+00> : vector<32x16xf32>
    %26 = tpu.matmul %24, %25, %cst_21 {dimension_numbers = #tpu.dot_dimension_numbers<[1], [0], [0], [1], [0, 0, 1, 1], [], []>} : vector<32x128xbf16>, vector<128x16xbf16>, vector<32x16xf32> -> vector<32x16xf32>
    %c0_22 = arith.constant 0 : index
    %c0_23 = arith.constant 0 : index
    %27 = vector.load %arg9[%c0_22, %c0_23] : memref<1x16xf32, #tpu.memory_space<vmem>>, vector<1x16xf32>
    %28 = vector.broadcast %27 : vector<1x16xf32> to vector<32x16xf32>
    %29 = arith.addf %26, %28 : vector<32x16xf32>
    %c0_24 = arith.constant 0 : index
    %c0_25 = arith.constant 0 : index
    %30 = vector.load %arg10[%c0_24, %c0_25] : memref<32x16xf32, #tpu.memory_space<vmem>>, vector<32x16xf32>
    tpu.vector_store %arg10[%c0_24, %c0_25], %29 {strides = array<i32>} : memref<32x16xf32, #tpu.memory_space<vmem>>, vector<32x16xf32>,
    return
  }
  func.func @transform_0(%arg0: i32) -> (i32, i32, i32) {
    %c0_i32 = arith.constant 0 : i32
    %c0_i32_0 = arith.constant 0 : i32
    %c0_i32_1 = arith.constant 0 : i32
    return %arg0, %c0_i32, %c0_i32_0 : i32, i32, i32
  }
  func.func @transform_1(%arg0: i32) -> (i32, i32, i32) {
    %c0_i32 = arith.constant 0 : i32
    %c0_i32_0 = arith.constant 0 : i32
    %c0_i32_1 = arith.constant 0 : i32
    return %arg0, %c0_i32, %c0_i32_0 : i32, i32, i32
  }
  func.func @transform_2(%arg0: i32) -> (i32, i32) {
    %c0_i32 = arith.constant 0 : i32
    %c0_i32_0 = arith.constant 0 : i32
    %c0_i32_1 = arith.constant 0 : i32
    return %c0_i32, %c0_i32_0 : i32, i32
  }
  func.func @transform_3(%arg0: i32) -> (i32, i32) {
    %c0_i32 = arith.constant 0 : i32
    %c0_i32_0 = arith.constant 0 : i32
    %c0_i32_1 = arith.constant 0 : i32
    return %c0_i32, %c0_i32_0 : i32, i32
  }
  func.func @transform_4(%arg0: i32) -> (i32, i32) {
    %c0_i32 = arith.constant 0 : i32
    %c0_i32_0 = arith.constant 0 : i32
    %c0_i32_1 = arith.constant 0 : i32
    return %c0_i32, %c0_i32_0 : i32, i32
  }
  func.func @transform_5(%arg0: i32) -> (i32, i32) {
    %c0_i32 = arith.constant 0 : i32
    %c0_i32_0 = arith.constant 0 : i32
    %c0_i32_1 = arith.constant 0 : i32
    return %c0_i32, %c0_i32_0 : i32, i32
  }
  func.func @transform_6(%arg0: i32) -> (i32, i32) {
    %c0_i32 = arith.constant 0 : i32
    %c0_i32_0 = arith.constant 0 : i32
    %c0_i32_1 = arith.constant 0 : i32
    return %c0_i32, %c0_i32_0 : i32, i32
  }
  func.func @transform_7(%arg0: i32) -> (i32, i32) {
    %c0_i32 = arith.constant 0 : i32
    %c0_i32_0 = arith.constant 0 : i32
    %c0_i32_1 = arith.constant 0 : i32
    return %c0_i32, %c0_i32_0 : i32, i32
  }
  func.func @transform_8(%arg0: i32) -> (i32, i32) {
    %c0_i32 = arith.constant 0 : i32
    %c0_i32_0 = arith.constant 0 : i32
    %c0_i32_1 = arith.constant 0 : i32
    return %c0_i32, %c0_i32_0 : i32, i32
  }
  func.func @transform_9(%arg0: i32) -> (i32, i32) {
    %c0_i32 = arith.constant 0 : i32
    %c0_i32_0 = arith.constant 0 : i32
    return %arg0, %c0_i32 : i32, i32
  }
}

</mosaic_0001>

<bundles_post_ra>
// kernel: tpu_custom_call.1
= control target key start
LH: loop header
LB: loop body
LE: loop exit
PB: predicated region body
PF: predicated region fallthrough
CT: control target
= control target key end

     0   :  { %s1387_s30 = smov 0   ;;  %s1614_s0 = inlined_call_operand.vmem [shape: f32[64,1,16], index: 0, kind: input, shape index: {}]   ;;  %s1615_s1 = inlined_call_operand.vmem [shape: f32[64,1,8], index: 1, kind: input, shape index: {}]   ;;  %s1616_s2 = inlined_call_operand.vmem [shape: bf16[16,128], index: 2, kind: input, shape index: {}]   ;;  %s1617_s3 = inlined_call_operand.vmem [shape: bf16[8,128], index: 3, kind: input, shape index: {}]   ;;  %s1618_s4 = inlined_call_operand.vmem [shape: f32[1,128], index: 4, kind: input, shape index: {}]   ;;  %s1619_s5 = inlined_call_operand.vmem [shape: bf16[128,128], index: 5, kind: input, shape index: {}]   ;;  %s1620_s6 = inlined_call_operand.vmem [shape: f32[1,128], index: 6, kind: input, shape index: {}]   ;;  %s1621_s7 = inlined_call_operand.vmem [shape: bf16[128,16], index: 7, kind: input, shape index: {}]   ;;  %s1622_s8 = inlined_call_operand.vmem [shape: f32[1,16], index: 8, kind: input, shape index: {}]   ;;  %s1623_s9 = inlined_call_operand.vmem [shape: f32[64,16], index: 9, kind: output, shape index: {}]  }
   0x1 LB: > { %s1186_s10 = sadd.s32 4294967295, %s1335_s30   ;;  %p1190_p0 = scmp.ge.s32.totalorder %s1335_s30, 1  ;;  %s1335_s30 = sphi %s1387_s30, %s19_s30  }
   0x2   : > { %p297_p1 = scmp.lt.s32.totalorder %s1335_s30, 3 }
   0x4   : > { %p298_p2 = pnand %p1190_p0, %p297_p1 }
   0x5   : > { %v483_v0 = vld [vmem:[%s1617_s3] sm:$0xf] (!%p298_p2)  ;;  %vm620_vm0 = vcmask (!%p298_p2), 1043456   ;;  %s1191_s15 = sshll.u32 (!%p298_p2), %s1186_s10, 5  ;;  %vm549_vm1 = vcmask (!%p298_p2), 1041409   ;;  %vm552_vm2 = vcmask (!%p298_p2), 1042434  }
   0x6   : > { %301 = sbr.rel (%p298_p2) target bundleno = 746 (0x2ea), region = 56  ;;  %v1312_v1 = vld [vmem:[%s1616_s2] sm:$0xff] (!%p298_p2)   ;;  %1303 = vmatprep.subr.msk.bf16.mxu1 (!%p298_p2), %vm620_vm0, %v483_v0  ;;  %v622_v2 = vsel (!%p298_p2), %vm620_vm0, %v483_v0, 0  ;;  %p337_p3 = scmp.lt.s32.totalorder (!%p298_p2), %s1191_s15, 63  ;;  %vm555_vm3 = vcmask (!%p298_p2), 1043459   ;;  %vm558_vm4 = vcmask (!%p298_p2), 1044484  }
   0x7   : > { %1253 = vmatprep.subr.bf16.mxu0 (!%p298_p2), %v1312_v1  ;;  %1248 = vmatpush3.bf16.msra.mxu1 (!%p298_p2), %v622_v2  ;;  %v1406_v3 = vld [vmem:[%s1619_s5] sm:$0xff] (!%p298_p2)   ;;  %vm561_vm5 = vcmask (!%p298_p2), 1045509   ;;  %vm564_vm6 = vcmask (!%p298_p2), 1046534   ;;  %vm567_vm7 = vcmask (!%p298_p2), 1047559   ;;  %vm613_vm8 = vcmask (!%p298_p2), 64512  }
   0x8   : > { %1254 = vmatpush3.bf16.msra.mxu0 (!%p298_p2), %v1312_v1  ;;  %1259 = vmatprep.subr.bf16.mxu1 (!%p298_p2), %v1406_v3  ;;  %vm801_vm9 = vcmask (!%p298_p2), 130048  }
   0xd   : > { %s1625_s15 = smov (!%p337_p3, %s1191_s15), 63 }
   0xe   : > { %s1415_s20 = scalar_lea.vmem %s1615_s1, %s1625_s15  ;;  %s1437_s23 = scalar_lea.vmem %s1614_s0, %s1625_s15 }
   0xf   : > { %v417_v4 = vld [vmem:[%s1415_s20] sm:$0x1]  ;;  %v418_v5 = vld [vmem:[%s1415_s20 + $0x1] sm:$0x1]  ;;  %v419_v6 = vld [vmem:[%s1415_s20 + $0x2] sm:$0x1] }
  0x10   : > { %v420_v7 = vld [vmem:[%s1415_s20 + $0x3] sm:$0x1]  ;;  %v421_v8 = vld [vmem:[%s1415_s20 + $0x4] sm:$0x1]  ;;  %v422_v9 = vld [vmem:[%s1415_s20 + $0x5] sm:$0x1]  ;;  %v450_v10 = vpack.c.bf16 %v418_v5, %v418_v5  ;;  %v451_v11 = vpack.c.bf16 %v419_v6, %v419_v6  ;;  %v449_v21 = vpack.c.bf16 %v417_v4, %v417_v4 }
  0x11   : > { %v423_v12 = vld [vmem:[%s1415_s20 + $0x6] sm:$0x1]  ;;  %v424_v13 = vld [vmem:[%s1415_s20 + $0x7] sm:$0x1]  ;;  %v425_v14 = vld [vmem:[%s1415_s20 + $0x8] sm:$0x1]  ;;  %v452_v15 = vpack.c.bf16 %v420_v7, %v420_v7  ;;  %v453_v16 = vpack.c.bf16 %v421_v8, %v421_v8  ;;  %v454_v17 = vpack.c.bf16 %v422_v9, %v422_v9 }
  0x12   : > { %v426_v18 = vld [vmem:[%s1415_s20 + $0x9] sm:$0x1]  ;;  %v427_v19 = vld [vmem:[%s1415_s20 + $0xa] sm:$0x1]  ;;  %v428_v20 = vld [vmem:[%s1415_s20 + $0xb] sm:$0x1]  ;;  %v455_v22 = vpack.c.bf16 %v423_v12, %v423_v12  ;;  %v456_v23 = vpack.c.bf16 %v424_v13, %v424_v13  ;;  %v457_v24 = vpack.c.bf16 %v425_v14, %v425_v14  ;;  %v517_v31 = vunpack.c.l.b16 %v450_v10 }
  0x13   : > { %v429_v25 = vld [vmem:[%s1415_s20 + $0xc] sm:$0x1]  ;;  %v430_v26 = vld [vmem:[%s1415_s20 + $0xd] sm:$0x1]  ;;  %v431_v27 = vld [vmem:[%s1415_s20 + $0xe] sm:$0x1]  ;;  %v458_v28 = vpack.c.bf16 %v426_v18, %v426_v18  ;;  %v459_v29 = vpack.c.bf16 %v427_v19, %v427_v19  ;;  %v460_v30 = vpack.c.bf16 %v428_v20, %v428_v20  ;;  %v518_v36 = vunpack.c.l.b16 %v451_v11 }
  0x14   : > { %v432_v32 = vld [vmem:[%s1415_s20 + $0xf] sm:$0x1]  ;;  %v461_v33 = vpack.c.bf16 %v429_v25, %v429_v25  ;;  %v462_v34 = vpack.c.bf16 %v430_v26, %v430_v26  ;;  %v463_v35 = vpack.c.bf16 %v431_v27, %v431_v27  ;;  %v519_v38 = vunpack.c.l.b16 %v452_v15  ;;  %v353_v57 = vld [vmem:[%s1437_s23] sm:$0x1]  ;;  %v354_v62 = vld [vmem:[%s1437_s23 + $0x1] sm:$0x1] }
  0x15   : > { %v464_v37 = vpack.c.bf16 %v432_v32, %v432_v32  ;;  %v520_v39 = vunpack.c.l.b16 %v453_v16  ;;  %v521_v40 = vunpack.c.l.b16 %v454_v17  ;;  %v516_v41 = vunpack.c.l.b16 %v449_v21  ;;  %v355_v4 = vld [vmem:[%s1437_s23 + $0x2] sm:$0x1]  ;;  %v356_v9 = vld [vmem:[%s1437_s23 + $0x3] sm:$0x1]  ;;  %v357_v10 = vld [vmem:[%s1437_s23 + $0x4] sm:$0x1] }
  0x16   : > { %v522_v42 = vunpack.c.l.b16 %v455_v22  ;;  %v523_v43 = vunpack.c.l.b16 %v456_v23  ;;  %v525_v44 = vunpack.c.l.b16 %v458_v28  ;;  %v524_v45 = vunpack.c.l.b16 %v457_v24  ;;  %v358_v14 = vld [vmem:[%s1437_s23 + $0x5] sm:$0x1]  ;;  %v359_v15 = vld [vmem:[%s1437_s23 + $0x6] sm:$0x1]  ;;  %v360_v19 = vld [vmem:[%s1437_s23 + $0x7] sm:$0x1] }
  0x17   : > { %v526_v46 = vunpack.c.l.b16 %v459_v29  ;;  %v527_v47 = vunpack.c.l.b16 %v460_v30  ;;  %v528_v48 = vunpack.c.l.b16 %v461_v33  ;;  %v529_v49 = vunpack.c.l.b16 %v462_v34  ;;  %v361_v20 = vld [vmem:[%s1437_s23 + $0x8] sm:$0x1]  ;;  %v362_v21 = vld [vmem:[%s1437_s23 + $0x9] sm:$0x1]  ;;  %v363_v26 = vld [vmem:[%s1437_s23 + $0xa] sm:$0x1] }
  0x18   : > { %v530_v50 = vunpack.c.l.b16 %v463_v35  ;;  %v548_v51 = vrot.slane %v517_v31, 7  ;;  %v551_v52 = vrot.slane %v518_v36, 6  ;;  %v531_v53 = vunpack.c.l.b16 %v464_v37  ;;  %v364_v27 = vld [vmem:[%s1437_s23 + $0xb] sm:$0x1]  ;;  %v365_v28 = vld [vmem:[%s1437_s23 + $0xc] sm:$0x1] }
  0x19   : > { %v554_v54 = vrot.slane %v519_v38, 5  ;;  %v557_v55 = vrot.slane %v520_v39, 4  ;;  %v560_v56 = vrot.slane %v521_v40, 3  ;;  %v563_v59 = vrot.slane %v522_v42, 2  ;;  %v366_v33 = vld [vmem:[%s1437_s23 + $0xd] sm:$0x1] }
  0x1a   : > { %v550_v58 = vsel %vm549_vm1, %v548_v51, %v516_v41  ;;  %v569_v60 = vrot.slane %v525_v44, 7  ;;  %v571_v61 = vrot.slane %v526_v46, 6  ;;  %v566_v0 = vrot.slane %v523_v43, 1  ;;  %v367_v34 = vld [vmem:[%s1437_s23 + $0xe] sm:$0x1] }
  0x1b   : > { %v553_v63 = vsel %vm552_vm2, %v551_v52, %v550_v58  ;;  %v573_v1 = vrot.slane %v527_v47, 5  ;;  %v575_v2 = vrot.slane %v528_v48, 4  ;;  %v577_v7 = vrot.slane %v529_v49, 3  ;;  %v368_v35 = vld [vmem:[%s1437_s23 + $0xf] sm:$0x1] }
  0x1c   : > { %v556_v5 = vsel %vm555_vm3, %v554_v54, %v553_v63  ;;  %v570_v6 = vsel %vm549_vm1, %v569_v60, %v524_v45  ;;  %v579_v8 = vrot.slane %v530_v50, 2  ;;  %v581_v13 = vrot.slane %v531_v53, 1 }
  0x1d   : > { %v559_v11 = vsel %vm558_vm4, %v557_v55, %v556_v5  ;;  %v572_v12 = vsel %vm552_vm2, %v571_v61, %v570_v6  ;;  %v385_v16 = vpack.c.bf16 %v353_v57, %v353_v57  ;;  %v386_v22 = vpack.c.bf16 %v354_v62, %v354_v62 }
  0x1e   : > { %v562_v17 = vsel %vm561_vm5, %v560_v56, %v559_v11  ;;  %v574_v18 = vsel %vm555_vm3, %v573_v1, %v572_v12  ;;  %v387_v23 = vpack.c.bf16 %v355_v4, %v355_v4  ;;  %v388_v29 = vpack.c.bf16 %v356_v9, %v356_v9  ;;  %v434_v12 = vld [vmem:[%s1415_s20 + $0x11] sm:$0x1] }
  0x1f   : > { %v565_v24 = vsel %vm564_vm6, %v563_v59, %v562_v17  ;;  %v576_v25 = vsel %vm558_vm4, %v575_v2, %v574_v18  ;;  %v389_v30 = vpack.c.bf16 %v357_v10, %v357_v10  ;;  %v390_v36 = vpack.c.bf16 %v358_v14, %v358_v14  ;;  %v436_v18 = vld [vmem:[%s1415_s20 + $0x13] sm:$0x1] }
  0x20   : > { %v568_v31 = vsel %vm567_vm7, %v566_v0, %v565_v24  ;;  %v578_v32 = vsel %vm561_vm5, %v577_v7, %v576_v25  ;;  %v391_v37 = vpack.c.bf16 %v359_v15, %v359_v15  ;;  %v392_v39 = vpack.c.bf16 %v360_v19, %v360_v19  ;;  %v433_v7 = vld [vmem:[%s1415_s20 + $0x10] sm:$0x1]  ;;  %v437_v19 = vld [vmem:[%s1415_s20 + $0x14] sm:$0x1]  ;;  %v438_v24 = vld [vmem:[%s1415_s20 + $0x15] sm:$0x1] }
  0x21   : > { %v580_v38 = vsel %vm564_vm6, %v579_v8, %v578_v32  ;;  %v393_v40 = vpack.c.bf16 %v361_v20, %v361_v20  ;;  %v394_v41 = vpack.c.bf16 %v362_v21, %v362_v21  ;;  %v395_v43 = vpack.c.bf16 %v363_v26, %v363_v26  ;;  %v439_v25 = vld [vmem:[%s1415_s20 + $0x16] sm:$0x1]  ;;  %v440_v26 = vld [vmem:[%s1415_s20 + $0x17] sm:$0x1]  ;;  %v443_v32 = vld [vmem:[%s1415_s20 + $0x1a] sm:$0x1] }
  0x22   : > { %v582_v42 = vsel %vm567_vm7, %v581_v13, %v580_v38  ;;  %v396_v44 = vpack.c.bf16 %v364_v27, %v364_v27  ;;  %v397_v45 = vpack.c.bf16 %v365_v28, %v365_v28  ;;  %v398_v47 = vpack.c.bf16 %v366_v33, %v366_v33  ;;  %v435_v13 = vld [vmem:[%s1415_s20 + $0x12] sm:$0x1]  ;;  %v444_v33 = vld [vmem:[%s1415_s20 + $0x1b] sm:$0x1]  ;;  %v446_v38 = vld [vmem:[%s1415_s20 + $0x1d] sm:$0x1] }
  0x23   : > { %v611_v46 = vpack.c.b16 %v582_v42, %v568_v31  ;;  %v399_v48 = vpack.c.bf16 %v367_v34, %v367_v34  ;;  %v400_v49 = vpack.c.bf16 %v368_v35, %v368_v35  ;;  %v706_v50 = vunpack.c.l.b16 %v386_v22  ;;  %v442_v31 = vld [vmem:[%s1415_s20 + $0x19] sm:$0x1]  ;;  %v447_v42 = vld [vmem:[%s1415_s20 + $0x1e] sm:$0x1] }
  0x24   : > { %v707_v51 = vunpack.c.l.b16 %v387_v23  ;;  %v708_v52 = vunpack.c.l.b16 %v388_v29  ;;  %v709_v53 = vunpack.c.l.b16 %v389_v30  ;;  %v705_v54 = vunpack.c.l.b16 %v385_v16 }
  0x25   : > { %1249 = vmatprep.mubr.msk.bf16.mxu1 %vm613_vm8, %v611_v46  ;;  %v710_v55 = vunpack.c.l.b16 %v390_v36  ;;  %v711_v56 = vunpack.c.l.b16 %v391_v37  ;;  %v712_v57 = vunpack.c.l.b16 %v392_v39  ;;  %v714_v58 = vunpack.c.l.b16 %v394_v41  ;;  %v441_v36 = vld [vmem:[%s1415_s20 + $0x18] sm:$0x1]  ;;  %v445_v37 = vld [vmem:[%s1415_s20 + $0x1c] sm:$0x1] }
  0x26   : > { %v715_v59 = vunpack.c.l.b16 %v395_v43  ;;  %v716_v60 = vunpack.c.l.b16 %v396_v44  ;;  %v717_v61 = vunpack.c.l.b16 %v397_v45  ;;  %v713_v62 = vunpack.c.l.b16 %v393_v40 }
  0x27   : > { %v718_v63 = vunpack.c.l.b16 %v398_v47  ;;  %v719_v0 = vunpack.c.l.b16 %v399_v48  ;;  %v737_v1 = vrot.slane %v706_v50, 7  ;;  %v720_v2 = vunpack.c.l.b16 %v400_v49  ;;  %v448_v47 = vld [vmem:[%s1415_s20 + $0x1f] sm:$0x1]  ;;  %s1193_s20 = sshll.u32 %s1186_s10, 2 }
  0x28   : > { %v739_v4 = vrot.slane %v707_v51, 6  ;;  %v741_v5 = vrot.slane %v708_v52, 5  ;;  %v743_v6 = vrot.slane %v709_v53, 4  ;;  %v745_v9 = vrot.slane %v710_v55, 3  ;;  %p347_p4 = scmp.lt.s32.totalorder %s1193_s20, 7 }
  0x29   : > { %v738_v8 = vsel %vm549_vm1, %v737_v1, %v705_v54  ;;  %v747_v10 = vrot.slane %v711_v56, 2  ;;  %v751_v11 = vrot.slane %v714_v58, 7  ;;  %v753_v15 = vrot.slane %v715_v59, 6 }
  0x2a   : > { %v740_v14 = vsel %vm552_vm2, %v739_v4, %v738_v8  ;;  %v755_v16 = vrot.slane %v716_v60, 5  ;;  %v757_v17 = vrot.slane %v717_v61, 4  ;;  %v749_v21 = vrot.slane %v712_v57, 1  ;;  %s1627_s20 = smov (!%p347_p4, %s1193_s20), 7 }
  0x2b   : > { %v742_v20 = vsel %vm555_vm3, %v741_v5, %v740_v14  ;;  %v752_v22 = vsel %vm549_vm1, %v751_v11, %v713_v62  ;;  %v759_v23 = vrot.slane %v718_v63, 3  ;;  %v761_v29 = vrot.slane %v719_v0, 2  ;;  %s1194_s21 = sshll.u32 %s1627_s20, 3 }
  0x2c   : > { %v744_v27 = vsel %vm558_vm4, %v743_v6, %v742_v20  ;;  %v754_v28 = vsel %vm552_vm2, %v753_v15, %v752_v22  ;;  %v763_v30 = vrot.slane %v720_v2, 1  ;;  %v465_v39 = vpack.c.bf16 %v433_v7, %v433_v7  ;;  %s350_s26 = scalar_lea.vmem %s1623_s9, %s1194_s21 }
  0x2d   : > { %v746_v34 = vsel %vm561_vm5, %v745_v9, %v744_v27  ;;  %v756_v35 = vsel %vm555_vm3, %v755_v16, %v754_v28  ;;  %v466_v43 = vpack.c.bf16 %v434_v12, %v434_v12  ;;  %v467_v44 = vpack.c.bf16 %v435_v13, %v435_v13  ;;  %v369_v27 = vld [vmem:[%s1437_s23 + $0x10] sm:$0x1] }
  0x2e   : > { %v748_v40 = vsel %vm564_vm6, %v747_v10, %v746_v34  ;;  %v758_v41 = vsel %vm558_vm4, %v757_v17, %v756_v35  ;;  %v468_v48 = vpack.c.bf16 %v436_v18, %v436_v18  ;;  %v469_v49 = vpack.c.bf16 %v437_v19, %v437_v19 }
  0x2f   : > { %v750_v45 = vsel %vm567_vm7, %v749_v21, %v748_v40  ;;  %v760_v46 = vsel %vm561_vm5, %v759_v23, %v758_v41  ;;  %v470_v51 = vpack.c.bf16 %v438_v24, %v438_v24  ;;  %v471_v52 = vpack.c.bf16 %v439_v25, %v439_v25 }
  0x30   : > { %v762_v50 = vsel %vm564_vm6, %v761_v29, %v760_v46  ;;  %v472_v53 = vpack.c.bf16 %v440_v26, %v440_v26  ;;  %v474_v55 = vpack.c.bf16 %v442_v31, %v442_v31  ;;  %v475_v56 = vpack.c.bf16 %v443_v32, %v443_v32  ;;  %v370_v32 = vld [vmem:[%s1437_s23 + $0x11] sm:$0x1] }
  0x31   : > { %v764_v54 = vsel %vm567_vm7, %v763_v30, %v762_v50  ;;  %v476_v57 = vpack.c.bf16 %v444_v33, %v444_v33  ;;  %v473_v59 = vpack.c.bf16 %v441_v36, %v441_v36  ;;  %v477_v60 = vpack.c.bf16 %v445_v37, %v445_v37  ;;  %v371_v33 = vld [vmem:[%s1437_s23 + $0x12] sm:$0x1]  ;;  %v379_v50 = vld [vmem:[%s1437_s23 + $0x1a] sm:$0x1] }
  0x32   : > { %v793_v58 = vpack.c.b16 %v764_v54, %v750_v45  ;;  %v478_v61 = vpack.c.bf16 %v446_v38, %v446_v38  ;;  %v479_v62 = vpack.c.bf16 %v447_v42, %v447_v42  ;;  %v533_v63 = vunpack.c.l.b16 %v466_v43  ;;  %v372_v38 = vld [vmem:[%s1437_s23 + $0x13] sm:$0x1]  ;;  %v374_v43 = vld [vmem:[%s1437_s23 + $0x15] sm:$0x1] }
  0x33   : > { %v534_v0 = vunpack.c.l.b16 %v467_v44  ;;  %v535_v1 = vunpack.c.l.b16 %v468_v48  ;;  %v480_v2 = vpack.c.bf16 %v448_v47, %v448_v47  ;;  %v532_v4 = vunpack.c.l.b16 %v465_v39  ;;  %v373_v39 = vld [vmem:[%s1437_s23 + $0x14] sm:$0x1]  ;;  %v375_v44 = vld [vmem:[%s1437_s23 + $0x16] sm:$0x1]  ;;  %v376_v48 = vld [vmem:[%s1437_s23 + $0x17] sm:$0x1] }
  0x34   : > { %1255 = vmatprep.mubr.msk.bf16.mxu0 %vm801_vm9, %v793_v58  ;;  %v536_v5 = vunpack.c.l.b16 %v469_v49  ;;  %v537_v6 = vunpack.c.l.b16 %v470_v51  ;;  %v538_v7 = vunpack.c.l.b16 %v471_v52  ;;  %v541_v8 = vunpack.c.l.b16 %v474_v55  ;;  %v378_v49 = vld [vmem:[%s1437_s23 + $0x19] sm:$0x1]  ;;  %v377_v55 = vld [vmem:[%s1437_s23 + $0x18] sm:$0x1] }
  0x35   : > { %v542_v9 = vunpack.c.l.b16 %v475_v56  ;;  %v543_v10 = vunpack.c.l.b16 %v476_v57  ;;  %v539_v11 = vunpack.c.l.b16 %v472_v53  ;;  %v540_v12 = vunpack.c.l.b16 %v473_v59  ;;  %v380_v56 = vld [vmem:[%s1437_s23 + $0x1b] sm:$0x1]  ;;  %v381_v57 = vld [vmem:[%s1437_s23 + $0x1c] sm:$0x1] }
  0x36   : > { %v544_v13 = vunpack.c.l.b16 %v477_v60  ;;  %v545_v14 = vunpack.c.l.b16 %v478_v61  ;;  %v546_v15 = vunpack.c.l.b16 %v479_v62  ;;  %v583_v16 = vrot.slane %v533_v63, 7  ;;  %v382_v62 = vld [vmem:[%s1437_s23 + $0x1d] sm:$0x1]  ;;  %v383_v63 = vld [vmem:[%s1437_s23 + $0x1e] sm:$0x1] }
  0x37   : > { %v585_v17 = vrot.slane %v534_v0, 6  ;;  %v587_v18 = vrot.slane %v535_v1, 5  ;;  %v547_v19 = vunpack.c.l.b16 %v480_v2  ;;  %v589_v20 = vrot.slane %v536_v5, 4 }
  0x38   : > { %v591_v21 = vrot.slane %v537_v6, 3  ;;  %v597_v22 = vrot.slane %v541_v8, 7  ;;  %v584_v23 = vsel %vm549_vm1, %v583_v16, %v532_v4  ;;  %v599_v24 = vrot.slane %v542_v9, 6  ;;  %v384_v4 = vld [vmem:[%s1437_s23 + $0x1f] sm:$0x1] }
  0x39   : > { %v601_v25 = vrot.slane %v543_v10, 5  ;;  %v603_v26 = vrot.slane %v544_v13, 4  ;;  %v586_v28 = vsel %vm552_vm2, %v585_v17, %v584_v23  ;;  %v593_v29 = vrot.slane %v538_v7, 2 }
  0x3a   : > { %v598_v30 = vsel %vm549_vm1, %v597_v22, %v540_v12  ;;  %v605_v31 = vrot.slane %v545_v14, 3  ;;  %v588_v34 = vsel %vm555_vm3, %v587_v18, %v586_v28  ;;  %v595_v35 = vrot.slane %v539_v11, 1  ;;  %v1314_v12 = vld [vmem:[%s1619_s5 + $0x8] sm:$0xff]  }
  0x3b   : > { %v600_v36 = vsel %vm552_vm2, %v599_v24, %v598_v30  ;;  %v607_v37 = vrot.slane %v546_v15, 2  ;;  %v590_v40 = vsel %vm558_vm4, %v589_v20, %v588_v34  ;;  %v609_v42 = vrot.slane %v547_v19, 1 }
  0x3c   : > { %v602_v41 = vsel %vm555_vm3, %v601_v25, %v600_v36  ;;  %v401_v45 = vpack.c.bf16 %v369_v27, %v369_v27  ;;  %v592_v46 = vsel %vm561_vm5, %v591_v21, %v590_v40  ;;  %v402_v51 = vpack.c.bf16 %v370_v32, %v370_v32 }
  0x3d   : > { %v604_v47 = vsel %vm558_vm4, %v603_v26, %v602_v41  ;;  %v403_v52 = vpack.c.bf16 %v371_v33, %v371_v33  ;;  %v594_v53 = vsel %vm564_vm6, %v593_v29, %v592_v46  ;;  %v404_v58 = vpack.c.bf16 %v372_v38, %v372_v38  ;;  %v1315_v29 = vld [vmem:[%s1619_s5 + $0x10] sm:$0xff]  }
  0x3e   : > { %v606_v54 = vsel %vm561_vm5, %v605_v31, %v604_v47  ;;  %v405_v59 = vpack.c.bf16 %v373_v39, %v373_v39  ;;  %v596_v60 = vsel %vm567_vm7, %v595_v35, %v594_v53  ;;  %v406_v0 = vpack.c.bf16 %v374_v43, %v374_v43 }
  0x3f   : > { %v608_v61 = vsel %vm564_vm6, %v607_v37, %v606_v54  ;;  %v407_v1 = vpack.c.bf16 %v375_v44, %v375_v44  ;;  %v408_v5 = vpack.c.bf16 %v376_v48, %v376_v48  ;;  %v410_v6 = vpack.c.bf16 %v378_v49, %v378_v49  ;;  %v1316_v44 = vld [vmem:[%s1619_s5 + $0x18] sm:$0xff]  }
  0x40   : > { %v610_v2 = vsel %vm567_vm7, %v609_v42, %v608_v61  ;;  %v411_v7 = vpack.c.bf16 %v379_v50, %v379_v50  ;;  %v409_v9 = vpack.c.bf16 %v377_v55, %v377_v55  ;;  %v412_v10 = vpack.c.bf16 %v380_v56, %v380_v56 }
  0x41   : > { %v612_v8 = vpack.c.b16 %v610_v2, %v596_v60  ;;  %v413_v11 = vpack.c.bf16 %v381_v57, %v381_v57  ;;  %v414_v13 = vpack.c.bf16 %v382_v62, %v382_v62  ;;  %v415_v14 = vpack.c.bf16 %v383_v63, %v383_v63  ;;  %v1317_v57 = vld [vmem:[%s1619_s5 + $0x20] sm:$0xff]   ;;  %v1318_v63 = vld [vmem:[%s1619_s5 + $0x28] sm:$0xff]  }
  0x42   : > { %v722_v15 = vunpack.c.l.b16 %v402_v51  ;;  %v723_v16 = vunpack.c.l.b16 %v403_v52  ;;  %v416_v17 = vpack.c.bf16 %v384_v4, %v384_v4  ;;  %v724_v18 = vunpack.c.l.b16 %v404_v58  ;;  %v1321_v2 = vld [vmem:[%s1621_s7] sm:$0xff]   ;;  %v1322_v4 = vld [vmem:[%s1621_s7 + $0x8] sm:$0xff]  }
  0x43   : > { %1250 = vmatmul.mubr.msk.bf16.vlgmr.msra.gmra.mrb[0].mxu1 %vm613_vm8, %v612_v8  ;;  %v725_v19 = vunpack.c.l.b16 %v405_v59  ;;  %v726_v20 = vunpack.c.l.b16 %v406_v0  ;;  %v721_v21 = vunpack.c.l.b16 %v401_v45  ;;  %v727_v22 = vunpack.c.l.b16 %v407_v1  ;;  %v1319_v0 = vld [vmem:[%s1619_s5 + $0x30] sm:$0xff]   ;;  %v1320_v1 = vld [vmem:[%s1619_s5 + $0x38] sm:$0xff]   ;;  %1279 = vmatprep.subr.bf16.mxu0 %v1321_v2  ;;  %v1326_v8 = vld [vmem:[%s1621_s7 + $0x28] sm:$0xff]  }
  0x44   : > { %v730_v23 = vunpack.c.l.b16 %v410_v6  ;;  %v731_v24 = vunpack.c.l.b16 %v411_v7  ;;  %1260 = vmatpush3.bf16.msra.mxu1 %v1406_v3  ;;  %v728_v25 = vunpack.c.l.b16 %v408_v5  ;;  %v729_v26 = vunpack.c.l.b16 %v409_v9  ;;  %v1323_v5 = vld [vmem:[%s1621_s7 + $0x10] sm:$0xff]   ;;  %v1324_v6 = vld [vmem:[%s1621_s7 + $0x18] sm:$0xff]   ;;  %v1325_v7 = vld [vmem:[%s1621_s7 + $0x20] sm:$0xff]  }
  0x45   : > { %v732_v27 = vunpack.c.l.b16 %v412_v10  ;;  %v733_v28 = vunpack.c.l.b16 %v413_v11  ;;  %1261 = vmatprep.subr.bf16.mxu1 %v1314_v12  ;;  %v734_v30 = vunpack.c.l.b16 %v414_v13  ;;  %v765_v31 = vrot.slane %v722_v15, 7 }
  0x46   : > { %v767_v32 = vrot.slane %v723_v16, 6  ;;  %v769_v33 = vrot.slane %v724_v18, 5  ;;  %v735_v34 = vunpack.c.l.b16 %v415_v14  ;;  %v736_v35 = vunpack.c.l.b16 %v416_v17  ;;  %v1200_v14 = vld [vmem:[%s1618_s4] ss:$0 sm:$0xff] }
  0x47   : > { %v771_v36 = vrot.slane %v725_v19, 4  ;;  %v773_v37 = vrot.slane %v726_v20, 3  ;;  %v766_v38 = vsel %vm549_vm1, %v765_v31, %v721_v21  ;;  %v779_v3 = vrot.slane %v730_v23, 7 }
  0x48   : > { %v781_v39 = vrot.slane %v731_v24, 6  ;;  %v783_v40 = vrot.slane %v732_v27, 5  ;;  %1262 = vmatpush3.bf16.msra.mxu1 %v1314_v12  ;;  %v768_v41 = vsel %vm552_vm2, %v767_v32, %v766_v38  ;;  %v775_v42 = vrot.slane %v727_v22, 2  ;;  %v1327_v32 = vld [vmem:[%s1621_s7 + $0x30] sm:$0xff]  }
  0x49   : > { %v785_v43 = vrot.slane %v733_v28, 4  ;;  %1263 = vmatprep.subr.bf16.mxu1 %v1315_v29  ;;  %v770_v45 = vsel %vm555_vm3, %v769_v33, %v768_v41  ;;  %v777_v46 = vrot.slane %v728_v25, 1  ;;  %v780_v47 = vsel %vm549_vm1, %v779_v3, %v729_v26  ;;  %v1328_v33 = vld [vmem:[%s1621_s7 + $0x38] sm:$0xff]  }
  0x4a   : > { %v787_v48 = vrot.slane %v734_v30, 3  ;;  %v772_v49 = vsel %vm558_vm4, %v771_v36, %v770_v45  ;;  %v782_v50 = vsel %vm552_vm2, %v781_v39, %v780_v47  ;;  %v789_v51 = vrot.slane %v735_v34, 2  ;;  %v1201_v34 = vld [vmem:[%s1620_s6] ss:$0 sm:$0xff] }
  0x4b   : > { %v774_v52 = vsel %vm561_vm5, %v773_v37, %v772_v49  ;;  %v784_v53 = vsel %vm555_vm3, %v783_v40, %v782_v50  ;;  %v791_v54 = vrot.slane %v736_v35, 1 }
  0x4c   : > { %1264 = vmatpush3.bf16.msra.mxu1 %v1315_v29  ;;  %v776_v55 = vsel %vm564_vm6, %v775_v42, %v774_v52  ;;  %v786_v56 = vsel %vm558_vm4, %v785_v43, %v784_v53 }
  0x4d   : > { %1265 = vmatprep.subr.bf16.mxu1 %v1316_v44  ;;  %v778_v58 = vsel %vm567_vm7, %v777_v46, %v776_v55  ;;  %v788_v59 = vsel %vm561_vm5, %v787_v48, %v786_v56  ;;  %v1210_v48 = vld [vmem:[%s1622_s8] ss:$0 sm:$0xff] }
  0x4e   : > { %v790_v60 = vsel %vm564_vm6, %v789_v51, %v788_v59 }
  0x4f   : > { %v792_v61 = vsel %vm567_vm7, %v791_v54, %v790_v60 }
  0x50   : > { %1266 = vmatpush3.bf16.msra.mxu1 %v1316_v44  ;;  %v794_v62 = vpack.c.b16 %v792_v61, %v778_v58 }
  0x51   : > { %1267 = vmatprep.subr.bf16.mxu1 %v1317_v57 }
  0x52   : > { %1256 = vmatmul.mubr.msk.bf16.vlgmr.msra.gmra.mrb[0].mxu0 %vm801_vm9, %v794_v62 }
  0x53   : > { %1280 = vmatpush3.bf16.msra.mxu0 %v1321_v2 }
  0x54   : > { %1268 = vmatpush3.bf16.msra.mxu1 %v1317_v57  ;;  %1281 = vmatprep.subr.bf16.mxu0 %v1322_v4 }
  0x55   : > { %1269 = vmatprep.subr.bf16.mxu1 %v1318_v63 }
  0x57   : > { %1282 = vmatpush3.bf16.msra.mxu0 %v1322_v4 }
  0x58   : > { %1270 = vmatpush3.bf16.msra.mxu1 %v1318_v63  ;;  %1283 = vmatprep.subr.bf16.mxu0 %v1323_v5 }
  0x59   : > { %1271 = vmatprep.subr.bf16.mxu1 %v1319_v0 }
  0x5b   : > { %1284 = vmatpush3.bf16.msra.mxu0 %v1323_v5 }
  0x5c   : > { %1272 = vmatpush3.bf16.msra.mxu1 %v1319_v0  ;;  %1285 = vmatprep.subr.bf16.mxu0 %v1324_v6 }
  0x5d   : > { %1273 = vmatprep.subr.bf16.mxu1 %v1320_v1 }
  0x5f   : > { %1286 = vmatpush3.bf16.msra.mxu0 %v1324_v6 }
  0x60   : > { %1274 = vmatpush3.bf16.msra.mxu1 %v1320_v1  ;;  %1287 = vmatprep.subr.bf16.mxu0 %v1325_v7 }
  0x63   : > { %1288 = vmatpush3.bf16.msra.mxu0 %v1325_v7 }
  0x64   : > { %1289 = vmatprep.subr.bf16.mxu0 %v1326_v8 }
  0x67   : > { %1290 = vmatpush3.bf16.msra.mxu0 %v1326_v8 }
  0x68   : > { %1291 = vmatprep.subr.bf16.mxu0 %v1327_v32 }
  0x6b   : > { %1292 = vmatpush3.bf16.msra.mxu0 %v1327_v32 }
  0x6c   : > { %1293 = vmatprep.subr.bf16.mxu0 %v1328_v33 }
  0x6f   : > { %1294 = vmatpush3.bf16.msra.mxu0 %v1328_v33 }
 0x116   : > { %v1251_v9 = vpop.f32.mrb[0].mxu1 }
 0x117   : > { %v658_v10 = vpop.f32.mrb[1].mxu1 }
 0x118   : > { %v1252_v11 = vpop.f32.mrb[2].mxu1 }
 0x119   : > { %v661_v12 = vpop.f32.mrb[3].mxu1 }
 0x125   : > { %v1257_v13 = vpop.f32.mrb[0].mxu0 }
 0x126   : > { %v851_v15 = vadd.f32 %v1257_v13, %v1251_v9  ;;  %v842_v16 = vpop.f32.mrb[1].mxu0 }
 0x127   : > { %v843_v17 = vadd.f32 %v842_v16, %v658_v10  ;;  %v1258_v18 = vpop.f32.mrb[2].mxu0 }
 0x128   : > { %v866_v19 = vadd.f32 %v1200_v14, %v851_v15  ;;  %v854_v20 = vadd.f32 %v1258_v18, %v1252_v11  ;;  %v845_v21 = vpop.f32.mrb[3].mxu0 }
 0x129   : > { %v864_v22 = vadd.f32 %v1200_v14, %v843_v17  ;;  %v846_v23 = vadd.f32 %v845_v21, %v661_v12 }
 0x12a   : > { %v867_v24 = vadd.f32 %v1200_v14, %v854_v20  ;;  %v870_v26 = vmax.f32 %v866_v19, 0.0 }
 0x12b   : > { %v865_v25 = vadd.f32 %v1200_v14, %v846_v23  ;;  %v868_v28 = vmax.f32 %v864_v22, 0.0 }
 0x12c   : > { %v871_v27 = vmax.f32 %v867_v24, 0.0 }
 0x12d   : > { %v869_v29 = vmax.f32 %v865_v25, 0.0 }
 0x12e   : > { %v873_v30 = vpack.c.bf16 %v871_v27, %v870_v26 }
 0x12f   : > { %v872_v31 = vpack.c.bf16 %v869_v29, %v868_v28 }
 0x131   : > { %1275 = vmatprep.mubr.bf16.mxu1 %v872_v31 }
 0x132   : > { %1276 = vmatmul.mubr.bf16.vlgmr.msra.gmra.mrb[4].mxu1 %v873_v30 }
 0x205   : > { %v1277_v35 = vpop.f32.mrb[4].mxu1 }
 0x206   : > { %v988_v36 = vadd.f32 %v1277_v35, %v1201_v34  ;;  %v979_v37 = vpop.f32.mrb[5].mxu1 }
 0x207   : > { %v980_v38 = vadd.f32 %v1201_v34, %v979_v37  ;;  %v1278_v3 = vpop.f32.mrb[6].mxu1 }
 0x208   : > { %v991_v39 = vadd.f32 %v1278_v3, %v1201_v34  ;;  %v982_v40 = vpop.f32.mrb[7].mxu1  ;;  %v996_v42 = vmax.f32 %v988_v36, 0.0 }
 0x209   : > { %v983_v41 = vadd.f32 %v1201_v34, %v982_v40  ;;  %v994_v44 = vmax.f32 %v980_v38, 0.0 }
 0x20a   : > { %v997_v43 = vmax.f32 %v991_v39, 0.0 }
 0x20b   : > { %v995_v45 = vmax.f32 %v983_v41, 0.0 }
 0x20c   : > { %v999_v46 = vpack.c.bf16 %v997_v43, %v996_v42 }
 0x20d   : > { %v998_v47 = vpack.c.bf16 %v995_v45, %v994_v44 }
 0x20f   : > { %1295 = vmatprep.mubr.bf16.mxu0 %v998_v47 }
 0x210   : > { %1296 = vmatmul.mubr.bf16.vlgmr.msra.gmra.mrb[4].mxu0 %v999_v46 }
 0x2e3   : > { %v1297_v49 = vpop.f32.mrb[4].mxu0 }
 0x2e4   : > { %v1105_v50 = vpop.f32.mrb[5].mxu0  ;;  %v1114_v55 = vadd.f32 %v1297_v49, %v1210_v48 }
 0x2e5   : > { %v1106_v51 = vadd.f32 %v1210_v48, %v1105_v50  ;;  %v1298_v52 = vpop.f32.mrb[6].mxu0 }
 0x2e6   : > { %v1108_v53 = vpop.f32.mrb[7].mxu0  ;;  %v1117_v56 = vadd.f32 %v1298_v52, %v1210_v48  ;;  %1122 = vst.msk [vmem:[%s350_s26 + $0x10] sm:$0xff] %vm801_vm9, %v1114_v55 }
 0x2e7   : > { %1120 = vst.msk [vmem:[%s350_s26] sm:$0xff] %vm801_vm9, %v1106_v51  ;;  %v1109_v54 = vadd.f32 %v1210_v48, %v1108_v53 }
 0x2e8   : > { %1123 = vst.msk [vmem:[%s350_s26 + $0x18] sm:$0xff] %vm801_vm9, %v1117_v56 }
 0x2e9   : > { %1121 = vst.msk [vmem:[%s350_s26 + $0x8] sm:$0xff] %vm801_vm9, %v1109_v54 }
 0x2ea PF: > { %s19_s30 = sadd.s32 1, %s1335_s30  }
 0x2eb   : > { %p16_p5 = scmp.ge.s32.totalorder %s19_s30, 4  }
 0x2ed   :  { %18 = sbr.rel (!%p16_p5) target bundleno = 1 (0x1), region = 89 }

</bundles_post_ra>
